<compile_context>
chip_gen: v5e
topology: v5e:2x2
jax: 0.10.0
libtpu: 0.0.40
codegen_flags: <defaults>
</compile_context>

<pallas_src>
import math

import jax
import jax.numpy as jnp
from jax.experimental import pallas as pl
from jax.experimental.pallas import tpu as pltpu


_LANE = 128


def _sublane(dtype):
    itemsize = jnp.dtype(dtype).itemsize
    if itemsize >= 4:
        return 8
    if itemsize == 2:
        return 16
    return 32


def _round_up(x, m):
    return ((x + m - 1) // m) * m


def _device_kind():
    try:
        return jax.devices()[0].device_kind.lower()
    except Exception:
        return ""


def _num_tensorcores():
    # v7x exposes 2 TensorCores per chip; v5e / v6e have 1.
    return 2 if "v7" in _device_kind() else 1


def _has_bf16_vpu():
    # v5e has no bf16 VALU; v6e / v7x do.
    kind = _device_kind()
    return not ("v5e" in kind or "v5 lite" in kind or "v5lite" in kind)


def _choose_tile_m(m, sub, target=512, min_steps=1):
    """Balanced row-tile size: single step for small M, ~target-row tiles
    otherwise, always a multiple of the dtype's sublane packing."""
    steps = max(min_steps, pl.cdiv(m, target))
    if steps <= 1:
        return max(sub, _round_up(m, sub))
    return max(sub, _round_up(pl.cdiv(m, steps), sub))


def _make_mlp_kernel(num_layers, epilogue_dtype):
    """Fused MLP kernel for a fixed (static) number of layers."""

    def kernel(x_ref, *refs):
        o_ref = refs[-1]
        wb_refs = refs[:-1]          # interleaved: w0, b0, w1, b1, ...
        h = x_ref[...]
        for i in range(num_layers):
            w = wb_refs[2 * i][...]                       # (in_d, out_d)
            b = wb_refs[2 * i + 1][...]                   # (1, out_d)
            # MXU in the parameter storage dtype (bf16 fast path); f32 acc.
            acc = jnp.dot(h.astype(w.dtype), w,
                          preferred_element_type=jnp.float32)
            # Epilogue (bias + ReLU) in epilogue_dtype: bf16 on v6e/v7x when
            # params are bf16 (halves VPU traffic / activation footprint and
            # removes the per-layer down-cast before the next MXU feed).
            h = acc.astype(epilogue_dtype) + b.astype(epilogue_dtype)
            if i < num_layers - 1:                        # ReLU except last
                h = jnp.maximum(h, 0)
        o_ref[...] = h.astype(o_ref.dtype)

    return kernel


def prepare_mlp_params(weights, biases):
    """One-time parameter prep (hoist out of the per-forward path).

    Zero-pads the last layer's output columns to a multiple of 128 lanes so
    the kernel's output block is lane-dense (unmasked vector stores).  Padded
    columns have weight=0 and bias=0, so they are exact zeros (not garbage).
    Returns (weights, biases, logical_out_dim).
    """
    weights = list(weights)
    biases = list(biases)
    out_dim = int(weights[-1].shape[1])
    out_dim_pad = _round_up(out_dim, _LANE)
    if out_dim_pad != out_dim:
        pad = out_dim_pad - out_dim
        weights[-1] = jnp.pad(weights[-1], ((0, 0), (0, pad)))
        biases[-1] = jnp.pad(biases[-1], ((0, 0), (0, pad)))
    return weights, biases, out_dim


def mlp_pallas(x, weights, biases, *, out_dim=None, target_tile_m=512,
               epilogue_dtype=None):
    """Apply the MLP to x of shape (..., input_dim).

    weights[i]: (in_i, out_i)  (already transposed vs. PyTorch)
    biases[i]:  (1, out_i)
    Prefer padding the last layer once via `prepare_mlp_params` and passing
    `out_dim`; otherwise a per-call fallback pad is applied here.
    """
    num_layers = len(weights)
    assert len(biases) == num_layers

    in_dim = int(weights[0].shape[0])
    last_w_cols = int(weights[-1].shape[1])
    if out_dim is None:
        out_dim = last_w_cols
    if last_w_cols % _LANE != 0:
        # Fallback per-call pad; prefer prepare_mlp_params() once outside.
        weights, biases, out_dim = prepare_mlp_params(weights, biases)
    out_dim_pad = int(weights[-1].shape[1])

    orig_lead = x.shape[:-1]
    assert x.shape[-1] == in_dim
    m = int(math.prod(orig_lead)) if orig_lead else 1
    x2 = x.reshape(m, in_dim)          # free reshape, no HBM round trip

    # Tile rows only.  No row padding of x: grid = cdiv(m, tile_m) and the
    # partial edge block is masked by Pallas on writeback.
    sub = _sublane(x.dtype)
    min_steps = 2 if (_num_tensorcores() >= 2 and m >= 2 * sub) else 1
    tile_m = _choose_tile_m(m, sub, target=int(target_tile_m),
                            min_steps=min_steps)
    grid = (pl.cdiv(m, tile_m),)

    param_dtype = jnp.dtype(weights[0].dtype)
    if epilogue_dtype is None:
        if param_dtype == jnp.bfloat16 and _has_bf16_vpu():
            epilogue_dtype = jnp.bfloat16
        else:
            epilogue_dtype = jnp.float32

    in_specs = [pl.BlockSpec((tile_m, in_dim), lambda i: (i, 0))]
    args = [x2]
    for w, b in zip(weights, biases):
        # Grid-resident (constant-index) weight / bias blocks.
        in_specs.append(pl.BlockSpec(tuple(w.shape), lambda i: (0, 0)))
        in_specs.append(pl.BlockSpec(tuple(b.shape), lambda i: (0, 0)))
        args.append(w)
        args.append(b)

    out_spec = pl.BlockSpec((tile_m, out_dim_pad), lambda i: (i, 0))

    # Advisory cost hint so XLA can schedule this tiny head off the critical
    # path of the surrounding DETR layers.
    flops = 2 * m * sum(int(w.shape[0]) * int(w.shape[1]) for w in weights)
    bytes_accessed = (
        m * in_dim * jnp.dtype(x.dtype).itemsize
        + m * out_dim_pad * jnp.dtype(x.dtype).itemsize
        + sum(int(w.size) * jnp.dtype(w.dtype).itemsize for w in weights)
        + sum(int(b.size) * jnp.dtype(b.dtype).itemsize for b in biases)
    )

    out = pl.pallas_call(
        _make_mlp_kernel(num_layers, epilogue_dtype),
        out_shape=jax.ShapeDtypeStruct((m, out_dim_pad), x.dtype),
        grid_spec=pltpu.PrefetchScalarGridSpec(
            num_scalar_prefetch=0,
            grid=grid,
            in_specs=in_specs,
            out_specs=out_spec,
        ),
        compiler_params=pltpu.CompilerParams(
            dimension_semantics=("parallel",)),
        cost_estimate=pl.CostEstimate(
            flops=flops, transcendentals=0, bytes_accessed=bytes_accessed),
    )(*args)

    if out_dim_pad != out_dim:
        out = out[:, :out_dim]         # cheap column slice only (no row slice)
    return out.reshape(*orig_lead, out_dim)


def init_mlp_params(key, input_dim, hidden_dim, output_dim, num_layers):
    """Deterministic init mirroring PyTorch nn.Linear default:
    U(-1/sqrt(fan_in), 1/sqrt(fan_in)) for both weight and bias."""
    h = [hidden_dim] * (num_layers - 1)
    dims = list(zip([input_dim] + h, h + [output_dim]))
    weights, biases = [], []
    for (n_in, n_out) in dims:
        key, kw, kb = jax.random.split(key, 3)
        bound = 1.0 / math.sqrt(n_in)
        # Stored as (in, out) == transpose of PyTorch's (out, in).
        w = jax.random.uniform(kw, (n_in, n_out), jnp.float32, -bound, bound)
        b = jax.random.uniform(kb, (1, n_out), jnp.float32, -bound, bound)
        weights.append(w)
        biases.append(b)
    return weights, biases


def mlp_reference(x, weights, biases):
    """Pure-JAX reference matching the PyTorch MLP.forward."""
    num_layers = len(weights)
    for i, (w, b) in enumerate(zip(weights, biases)):
        x = x @ w + b[0]
        if i < num_layers - 1:
            x = jax.nn.relu(x)
    return x


if __name__ == "__main__":
    # bbox_embed-style head of DeformableDETR:
    # (batch, num_queries, hidden) -> (batch, num_queries, output_dim)
    batch, seq = 2, 8
    input_dim, hidden_dim, output_dim, num_layers = 32, 32, 4, 3

    key = jax.random.PRNGKey(0)
    key, kx = jax.random.split(key)
    x = jax.random.normal(kx, (batch, seq, input_dim), jnp.float32)

    weights, biases = init_mlp_params(
        key, input_dim, hidden_dim, output_dim, num_layers)

    # One-time parameter prep, hoisted out of the forward path.
    pweights, pbiases, out_dim = prepare_mlp_params(weights, biases)

    # Main f32 path.
    out = jax.block_until_ready(mlp_pallas(x, pweights, pbiases, out_dim=out_dim))
    ref = mlp_reference(x, weights, biases)
    assert out.shape == (batch, seq, output_dim)
    assert jnp.allclose(out, ref, atol=1e-5, rtol=1e-5)

    # Edge-masking path: M not a multiple of the row tile -> partial last
    # block, handled by Pallas (no row padding / row slice in the wrapper).
    x_odd = jax.random.normal(jax.random.PRNGKey(1), (3, 7, input_dim),
                              jnp.float32)
    out_odd = jax.block_until_ready(
        mlp_pallas(x_odd, pweights, pbiases, out_dim=out_dim))
    assert out_odd.shape == (3, 7, output_dim)
    assert jnp.allclose(out_odd, mlp_reference(x_odd, weights, biases),
                        atol=1e-5, rtol=1e-5)

    # bf16 fast path (bf16 MXU feed, f32 accumulation) validated against the
    # f32 reference with a loose tolerance.
    bweights = [w.astype(jnp.bfloat16) for w in pweights]
    bbiases = [b.astype(jnp.bfloat16) for b in pbiases]
    out_bf16 = jax.block_until_ready(
        mlp_pallas(x.astype(jnp.bfloat16), bweights, bbiases, out_dim=out_dim))
    assert out_bf16.shape == (batch, seq, output_dim)
    assert jnp.allclose(out_bf16.astype(jnp.float32), ref, atol=0.1, rtol=0.1)

    print("KERNEL_OK")
</pallas_src>

<mosaic_0001>
module attributes {stable_mosaic.version = 11 : i64} {
  func.func @kernel(%arg0: i32, %arg1: memref<16x32xf32, #tpu.memory_space<vmem>>, %arg2: memref<32x32xf32, #tpu.memory_space<vmem>>, %arg3: memref<1x32xf32, #tpu.memory_space<vmem>>, %arg4: memref<32x32xf32, #tpu.memory_space<vmem>>, %arg5: memref<1x32xf32, #tpu.memory_space<vmem>>, %arg6: memref<32x128xf32, #tpu.memory_space<vmem>>, %arg7: memref<1x128xf32, #tpu.memory_space<vmem>>, %arg8: memref<16x128xf32, #tpu.memory_space<vmem>>) attributes {dimension_semantics = [#tpu.dimension_semantics<parallel>], iteration_bounds = array<i64: 1>, scalar_prefetch = 0 : i64, scratch_operands = 0 : i64, tpu.core_type = #tpu.core_type<tc>, window_params = [{transform_indices = @transform_0, window_bounds = array<i64: 16, 32>}, {pipeline_mode = #tpu.pipeline_mode<synchronous>, transform_indices = @transform_1, window_bounds = array<i64: 32, 32>}, {pipeline_mode = #tpu.pipeline_mode<synchronous>, transform_indices = @transform_2, window_bounds = array<i64: 1, 32>}, {pipeline_mode = #tpu.pipeline_mode<synchronous>, transform_indices = @transform_3, window_bounds = array<i64: 32, 32>}, {pipeline_mode = #tpu.pipeline_mode<synchronous>, transform_indices = @transform_4, window_bounds = array<i64: 1, 32>}, {pipeline_mode = #tpu.pipeline_mode<synchronous>, transform_indices = @transform_5, window_bounds = array<i64: 32, 128>}, {pipeline_mode = #tpu.pipeline_mode<synchronous>, transform_indices = @transform_6, window_bounds = array<i64: 1, 128>}, {transform_indices = @transform_7, window_bounds = array<i64: 16, 128>}]} {
    %c0 = arith.constant 0 : index
    %c0_0 = arith.constant 0 : index
    %0 = vector.load %arg1[%c0, %c0_0] : memref<16x32xf32, #tpu.memory_space<vmem>>, vector<16x32xf32>
    %c0_1 = arith.constant 0 : index
    %c0_2 = arith.constant 0 : index
    %1 = vector.load %arg2[%c0_1, %c0_2] : memref<32x32xf32, #tpu.memory_space<vmem>>, vector<32x32xf32>
    %c0_3 = arith.constant 0 : index
    %c0_4 = arith.constant 0 : index
    %2 = vector.load %arg3[%c0_3, %c0_4] : memref<1x32xf32, #tpu.memory_space<vmem>>, vector<1x32xf32>
    %cst = arith.constant dense<0.000000e+00> : vector<16x32xf32>
    %3 = tpu.matmul %0, %1, %cst {dimension_numbers = #tpu.dot_dimension_numbers<[1], [0], [0], [1], [0, 0, 1, 1], [], []>} : vector<16x32xf32>, vector<32x32xf32>, vector<16x32xf32> -> vector<16x32xf32>
    %4 = vector.broadcast %2 : vector<1x32xf32> to vector<16x32xf32>
    %5 = arith.addf %3, %4 : vector<16x32xf32>
    %cst_5 = arith.constant 0.000000e+00 : f32
    %6 = vector.broadcast %cst_5 : f32 to vector<16x32xf32>
    %7 = arith.maximumf %5, %6 : vector<16x32xf32>
    %c0_6 = arith.constant 0 : index
    %c0_7 = arith.constant 0 : index
    %8 = vector.load %arg4[%c0_6, %c0_7] : memref<32x32xf32, #tpu.memory_space<vmem>>, vector<32x32xf32>
    %c0_8 = arith.constant 0 : index
    %c0_9 = arith.constant 0 : index
    %9 = vector.load %arg5[%c0_8, %c0_9] : memref<1x32xf32, #tpu.memory_space<vmem>>, vector<1x32xf32>
    %cst_10 = arith.constant dense<0.000000e+00> : vector<16x32xf32>
    %10 = tpu.matmul %7, %8, %cst_10 {dimension_numbers = #tpu.dot_dimension_numbers<[1], [0], [0], [1], [0, 0, 1, 1], [], []>} : vector<16x32xf32>, vector<32x32xf32>, vector<16x32xf32> -> vector<16x32xf32>
    %11 = vector.broadcast %9 : vector<1x32xf32> to vector<16x32xf32>
    %12 = arith.addf %10, %11 : vector<16x32xf32>
    %cst_11 = arith.constant 0.000000e+00 : f32
    %13 = vector.broadcast %cst_11 : f32 to vector<16x32xf32>
    %14 = arith.maximumf %12, %13 : vector<16x32xf32>
    %c0_12 = arith.constant 0 : index
    %c0_13 = arith.constant 0 : index
    %15 = vector.load %arg6[%c0_12, %c0_13] : memref<32x128xf32, #tpu.memory_space<vmem>>, vector<32x128xf32>
    %c0_14 = arith.constant 0 : index
    %c0_15 = arith.constant 0 : index
    %16 = vector.load %arg7[%c0_14, %c0_15] : memref<1x128xf32, #tpu.memory_space<vmem>>, vector<1x128xf32>
    %cst_16 = arith.constant dense<0.000000e+00> : vector<16x128xf32>
    %17 = tpu.matmul %14, %15, %cst_16 {dimension_numbers = #tpu.dot_dimension_numbers<[1], [0], [0], [1], [0, 0, 1, 1], [], []>} : vector<16x32xf32>, vector<32x128xf32>, vector<16x128xf32> -> vector<16x128xf32>
    %18 = vector.broadcast %16 : vector<1x128xf32> to vector<16x128xf32>
    %19 = arith.addf %17, %18 : vector<16x128xf32>
    %c0_17 = arith.constant 0 : index
    %c0_18 = arith.constant 0 : index
    %20 = vector.load %arg8[%c0_17, %c0_18] : memref<16x128xf32, #tpu.memory_space<vmem>>, vector<16x128xf32>
    tpu.vector_store %arg8[%c0_17, %c0_18], %19 {strides = array<i32>} : memref<16x128xf32, #tpu.memory_space<vmem>>, vector<16x128xf32>,
    return
  }
  func.func @transform_0(%arg0: i32) -> (i32, i32) {
    %c0_i32 = arith.constant 0 : i32
    %c0_i32_0 = arith.constant 0 : i32
    return %arg0, %c0_i32 : i32, i32
  }
  func.func @transform_1(%arg0: i32) -> (i32, i32) {
    %c0_i32 = arith.constant 0 : i32
    %c0_i32_0 = arith.constant 0 : i32
    %c0_i32_1 = arith.constant 0 : i32
    return %c0_i32, %c0_i32_0 : i32, i32
  }
  func.func @transform_2(%arg0: i32) -> (i32, i32) {
    %c0_i32 = arith.constant 0 : i32
    %c0_i32_0 = arith.constant 0 : i32
    %c0_i32_1 = arith.constant 0 : i32
    return %c0_i32, %c0_i32_0 : i32, i32
  }
  func.func @transform_3(%arg0: i32) -> (i32, i32) {
    %c0_i32 = arith.constant 0 : i32
    %c0_i32_0 = arith.constant 0 : i32
    %c0_i32_1 = arith.constant 0 : i32
    return %c0_i32, %c0_i32_0 : i32, i32
  }
  func.func @transform_4(%arg0: i32) -> (i32, i32) {
    %c0_i32 = arith.constant 0 : i32
    %c0_i32_0 = arith.constant 0 : i32
    %c0_i32_1 = arith.constant 0 : i32
    return %c0_i32, %c0_i32_0 : i32, i32
  }
  func.func @transform_5(%arg0: i32) -> (i32, i32) {
    %c0_i32 = arith.constant 0 : i32
    %c0_i32_0 = arith.constant 0 : i32
    %c0_i32_1 = arith.constant 0 : i32
    return %c0_i32, %c0_i32_0 : i32, i32
  }
  func.func @transform_6(%arg0: i32) -> (i32, i32) {
    %c0_i32 = arith.constant 0 : i32
    %c0_i32_0 = arith.constant 0 : i32
    %c0_i32_1 = arith.constant 0 : i32
    return %c0_i32, %c0_i32_0 : i32, i32
  }
  func.func @transform_7(%arg0: i32) -> (i32, i32) {
    %c0_i32 = arith.constant 0 : i32
    %c0_i32_0 = arith.constant 0 : i32
    return %arg0, %c0_i32 : i32, i32
  }
}

</mosaic_0001>

<bundles_post_ra>
// kernel: tpu_custom_call.1
= control target key start
LH: loop header
LB: loop body
LE: loop exit
PB: predicated region body
PF: predicated region fallthrough
CT: control target
= control target key end

     0   :  { %12 = vsyncpa [#allocation3], 0  ;;  %s471_s0 = inlined_call_operand.hbm [shape: f32[16,32], index: 0, kind: input, shape index: {}]   ;;  %s472_s1 = inlined_call_operand.hbm [shape: f32[32,32], index: 1, kind: input, shape index: {}]   ;;  %s473_s2 = inlined_call_operand.vmem [shape: f32[1,32], index: 2, kind: input, shape index: {}]   ;;  %s474_s3 = inlined_call_operand.hbm [shape: f32[32,32], index: 3, kind: input, shape index: {}]   ;;  %s475_s4 = inlined_call_operand.vmem [shape: f32[1,32], index: 4, kind: input, shape index: {}]   ;;  %s476_s5 = inlined_call_operand.hbm [shape: f32[32,128], index: 5, kind: input, shape index: {}]   ;;  %s477_s6 = inlined_call_operand.vmem [shape: f32[1,128], index: 6, kind: input, shape index: {}]   ;;  %s478_s7 = inlined_call_operand.hbm [shape: f32[16,128], index: 7, kind: output, shape index: {}]  }
   0x1   :  { %13 = vsyncpa [#allocation6], 0 }
   0x2   :  { %14 = vsyncpa [#allocation9], 0 }
   0x3   :  { %15 = vsyncpa [#allocation4], 0  ;;  %s33_s26 = sshll.u32 %s472_s1, 4  ;;  %s379_s27 = smov [#allocation5]   ;;  %s34_s26 = int_to_ptr.hbm [resolvable:$true] %s33_s26 }
   0x4   :  { %s35_s28 = sshll.u32 %s379_s27, 4  ;;  %s20_s8 = sshll.u32 %s471_s0, 4  ;;  %s36_s28 = int_to_ptr.vmem [resolvable:$true] %s35_s28  ;;  %s21_s8 = int_to_ptr.hbm [resolvable:$true] %s20_s8 }
   0x5   :  { %s380_s9 = smov 128   ;;  %s381_s10 = smov 8  }
   0x6   :  { %41 = dma.hbm_to_vmem [thread:$0]  %s34_s26, 512, %s36_s28, [#allocation6], %s380_s9, %s380_s9, %s381_s10  }
   0x7   :  { %s382_s11 = smov [#allocation2]   ;;  %s48_s1 = sshll.u32 %s474_s3, 4  ;;  %s49_s1 = int_to_ptr.hbm [resolvable:$true] %s48_s1 }
   0x8   :  { %s22_s12 = sshll.u32 %s382_s11, 4  ;;  %s63_s16 = sshll.u32 %s476_s5, 4  ;;  %s23_s12 = int_to_ptr.vmem [resolvable:$true] %s22_s12  ;;  %s64_s16 = int_to_ptr.hbm [resolvable:$true] %s63_s16 }
   0x9   :  { %28 = dma.hbm_to_vmem [thread:$0]  %s21_s8, 256, %s23_s12, [#allocation3], %s380_s9, %s380_s9, %s381_s10  }
   0xa   :  { %s383_s17 = smov [#allocation7]   ;;  %s384_s19 = smov [#allocation8]  }
   0xb   :  { %s50_s18 = sshll.u32 %s383_s17, 4  ;;  %s65_s3 = sshll.u32 %s384_s19, 4  ;;  %s51_s18 = int_to_ptr.vmem [resolvable:$true] %s50_s18  ;;  %s66_s3 = int_to_ptr.vmem [resolvable:$true] %s65_s3 }
   0xc   :  { %56 = dma.hbm_to_vmem [thread:$0]  %s49_s1, 512, %s51_s18, [#allocation6], %s380_s9, %s380_s9, %s381_s10  }
   0xd   :  { %71 = dma.hbm_to_vmem [thread:$0]  %s64_s16, 512, %s66_s3, [#allocation9], %s380_s9, %s380_s9, %s381_s10  }
   0xe   :  { %371 = dma.done.wait [#allocation3], 256  }
   0xf   :  { %372 = vsyncadd [#allocation3], 4294967040 }
  0x10   :  { %373 = dma.done.wait [#allocation6], 1024  }
  0x11   :  { %374 = vsyncadd [#allocation6], 4294966272 }
  0x12   :  { %375 = dma.done.wait [#allocation9], 512  }
  0x13   :  { %376 = vsyncadd [#allocation9], 4294966784  ;;  %v95_v0 = vld [vmem:[#allocation5 + $0x18] sm:$0xff]  ;;  %v94_v1 = vld [vmem:[#allocation5 + $0x10] sm:$0xff]  ;;  %vm100_vm0 = vcmask 261120   ;;  %s385_s24 = smov [#allocation10]  }
  0x14   :  { %119 = vmatpush.msra.mxu0 %v95_v0  ;;  %237 = vmatpush.msra.mxu3 %v95_v0  ;;  %v93_v2 = vld [vmem:[#allocation5 + $0x8] sm:$0xff]  ;;  %v135_v3 = vld [vmem:[#allocation7 + $0x18] sm:$0xff]  ;;  %v92_v4 = vld [vmem:[#allocation5] sm:$0xff]  ;;  %s214_s25 = sshll.u32 %s385_s24, 4  ;;  %s216_s27 = sshll.u32 %s478_s7, 4  ;;  %s215_s25 = int_to_ptr.vmem [resolvable:$true] %s214_s25  ;;  %s217_s27 = int_to_ptr.hbm [resolvable:$true] %s216_s27 }
  0x15   :  { %158 = vmatpush.msra.mxu1 %v135_v3  ;;  %v90_v5 = vld [vmem:[#allocation2] sm:$0xff]  ;;  %v91_v6 = vld [vmem:[#allocation2 + $0x8] sm:$0xff]  ;;  %v133_v8 = vld [vmem:[#allocation7 + $0x8] sm:$0xff] }
  0x16   :  { %120 = vmatpush.msra.mxu0 %v94_v1  ;;  %238 = vmatpush.msra.mxu3 %v94_v1  ;;  %v134_v7 = vld [vmem:[#allocation7 + $0x10] sm:$0xff]  ;;  %v132_v9 = vld [vmem:[#allocation7] sm:$0xff]  ;;  %v174_v10 = vld [vmem:[#allocation8 + $0x18] sm:$0xff] }
  0x17   :  { %159 = vmatpush.msra.mxu1 %v134_v7  ;;  %197 = vmatpush.msra.mxu2 %v174_v10  ;;  %v248_v11 = vld [vmem:[%s473_s2] ss:$0 sm:$0xff]  ;;  %v172_v19 = vld [vmem:[#allocation8 + $0x8] sm:$0xff]  ;;  %v171_v20 = vld [vmem:[#allocation8] sm:$0xff] }
  0x18   :  { %121 = vmatpush.msra.mxu0 %v93_v2  ;;  %239 = vmatpush.msra.mxu3 %v93_v2  ;;  %v173_v18 = vld [vmem:[#allocation8 + $0x10] sm:$0xff] }
  0x19   :  { %160 = vmatpush.msra.mxu1 %v133_v8  ;;  %198 = vmatpush.msra.mxu2 %v173_v18  ;;  %v249_v21 = vld [vmem:[%s475_s4] ss:$0 sm:$0xff] }
  0x1a   :  { %122 = vmatpush.msra.mxu0 %v92_v4  ;;  %240 = vmatpush.msra.mxu3 %v92_v4  ;;  %v250_v28 = vld [vmem:[%s477_s6] ss:$0 sm:$0xff] }
  0x1b   :  { %231 = vmatmul.msk.f32.vlgmr.msra.gmra.mxu0 %vm100_vm0, %v90_v5  ;;  %232 = vmatmul.msk.f32.vlgmr.msra.gmra.mxu3 %vm100_vm0, %v91_v6 }
  0x1c   :  { %161 = vmatpush.msra.mxu1 %v132_v9  ;;  %199 = vmatpush.msra.mxu2 %v172_v19 }
  0x1e   :  { %200 = vmatpush.msra.mxu2 %v171_v20 }
  0x98   :  { %v124_v12 = vpop.f32.mrf.mxu0 }
  0x99   :  { %v125_v13 = vadd.f32 %v248_v11, %v124_v12 }
  0x9b   :  { %v130_v14 = vmax.f32 %v125_v13, 0.0 }
  0x9d   :  { %233 = vmatmul.msk.f32.vlgmr.msra.gmra.mxu1 %vm100_vm0, %v130_v14 }
  0x9e   :  { %v127_v15 = vpop.f32.mrf.mxu3 }
  0x9f   :  { %v128_v16 = vadd.f32 %v248_v11, %v127_v15 }
  0xa1   :  { %v131_v17 = vmax.f32 %v128_v16, 0.0 }
  0xa5   :  { %234 = vmatmul.msk.f32.gmra.mxu1 %vm100_vm0, %v131_v17 }
 0x11a   :  { %v163_v22 = vpop.f32.mrf.mxu1 }
 0x11b   :  { %v164_v23 = vadd.f32 %v249_v21, %v163_v22 }
 0x11d   :  { %v169_v24 = vmax.f32 %v164_v23, 0.0 }
 0x11f   :  { %235 = vmatmul.msk.f32.vlgmr.msra.gmra.mxu2 %vm100_vm0, %v169_v24 }
 0x122   :  { %v166_v25 = vpop.f32.mrf.mxu1 }
 0x123   :  { %v167_v26 = vadd.f32 %v249_v21, %v166_v25 }
 0x125   :  { %v170_v27 = vmax.f32 %v167_v26, 0.0 }
 0x127   :  { %236 = vmatmul.msk.f32.gmra.mxu2 %vm100_vm0, %v170_v27 }
 0x1a2   :  { %v202_v29 = vpop.f32.mrf.mxu2 }
 0x1a3   :  { %v203_v30 = vadd.f32 %v250_v28, %v202_v29 }
 0x1a5   :  { %208 = vst [vmem:[#allocation10] sm:$0xff] %v203_v30 }
 0x1aa   :  { %v205_v31 = vpop.f32.mrf.mxu2 }
 0x1ab   :  { %v206_v32 = vadd.f32 %v250_v28, %v205_v31 }
 0x1ad   :  { %209 = vst [vmem:[#allocation10 + $0x8] sm:$0xff] %v206_v32 }
 0x1ae   :  { %222 = dma.vmem_to_hbm [thread:$0]  %s215_s25, 256, %s217_s27, [#allocation4], %s380_s9, %s380_s9, %s381_s10  }
 0x1af   :  { %377 = dma.done.wait [#allocation4], 256  }
 0x1b0   :  { %378 = vsyncadd [#allocation4], 4294967040 }
 0x1b1   :  { %227 = vsyncpa [#allocation3], 1 }
 0x1b2   :  { %228 = vsyncpa [#allocation6], 1 }
 0x1b3   :  { %229 = vsyncpa [#allocation9], 1 }
 0x1b4   :  { %230 = vsyncpa [#allocation4], 1 }

</bundles_post_ra>
